<compile_context>
chip_gen: v6e
topology: v6e:2x2x1
jax: 0.10.0
libtpu: 0.0.40
codegen_flags: <defaults>
</compile_context>

<pallas_src>
import functools
import numpy as np
import jax
import jax.numpy as jnp
from jax import lax
from jax.experimental import pallas as pl
from jax.experimental.pallas import tpu as pltpu

PAD_IDX = 0
LN_EPS = 1e-5
NEG_INF = -1e9
# 32 MiB scoped VMEM: safe on v5e/v6e (128 MiB physical) and inside v7x's 64 MiB.
VMEM_LIMIT = 32 * 1024 * 1024


def _round_up(x, m):
    return (x + m - 1) // m * m


# ----------------------------- tiled matmul kernel -----------------------------

def _matmul_kernel(x_ref, w_ref, b_ref, o_ref, acc_ref, *, relu):
    @pl.when(pl.program_id(2) == 0)
    def _():
        acc_ref[...] = jnp.zeros_like(acc_ref)

    acc_ref[...] += jnp.dot(x_ref[...], w_ref[...],
                            preferred_element_type=jnp.float32)

    @pl.when(pl.program_id(2) == pl.num_programs(2) - 1)
    def _():
        y = acc_ref[...] + b_ref[...]
        if relu:
            y = jnp.maximum(y, 0.0)
        o_ref[...] = y


def linear(x2d, w, b, relu=False, tm_cap=256, tn_cap=256, tk_cap=256):
    """(M, K) @ (K, N) + (N,) -> (M, N).  bf16 MXU inputs, f32 accumulation.

    Tile caps (256/256/256) keep double-buffered VMEM use < ~2 MiB, leaving huge
    headroom on v7x's 64 MiB VMEM while still producing 128x128+ MXU tiles.
    """
    M, K = x2d.shape
    Kw, N = w.shape
    assert Kw == K
    tm = min(tm_cap, _round_up(M, 8))
    tn = min(tn_cap, _round_up(N, 128))
    tk = min(tk_cap, _round_up(K, 128))
    Mp, Np, Kp = _round_up(M, tm), _round_up(N, tn), _round_up(K, tk)

    xp = jnp.pad(x2d.astype(jnp.bfloat16), ((0, Mp - M), (0, Kp - K)))
    wp = jnp.pad(w.astype(jnp.bfloat16), ((0, Kp - K), (0, Np - N)))
    bp = jnp.pad(b.astype(jnp.float32), (0, Np - N)).reshape(1, Np)

    out = pl.pallas_call(
        functools.partial(_matmul_kernel, relu=relu),
        out_shape=jax.ShapeDtypeStruct((Mp, Np), jnp.float32),
        grid=(Mp // tm, Np // tn, Kp // tk),
        in_specs=[
            pl.BlockSpec((tm, tk), lambda i, j, k: (i, k)),
            pl.BlockSpec((tk, tn), lambda i, j, k: (k, j)),
            pl.BlockSpec((1, tn), lambda i, j, k: (0, j)),
        ],
        out_specs=pl.BlockSpec((tm, tn), lambda i, j, k: (i, j)),
        scratch_shapes=[pltpu.VMEM((tm, tn), jnp.float32)],
        compiler_params=pltpu.CompilerParams(
            dimension_semantics=("parallel", "parallel", "arbitrary"),
            vmem_limit_bytes=VMEM_LIMIT),
        cost_estimate=pl.CostEstimate(
            flops=2 * Mp * Np * Kp,
            transcendentals=0,
            bytes_accessed=Mp * Kp * 2 + Kp * Np * 2 + Np * 4 + Mp * Np * 4),
    )(xp, wp, bp)
    return out[:M, :N]


# ------------------------- fused residual-add + LayerNorm -------------------------

def _add_ln_kernel(x_ref, r_ref, g_ref, b_ref, o_ref):
    x = x_ref[...] + r_ref[...]
    mean = jnp.mean(x, axis=-1, keepdims=True)
    var = jnp.mean(jnp.square(x - mean), axis=-1, keepdims=True)
    o_ref[...] = (x - mean) * lax.rsqrt(var + LN_EPS) * g_ref[...] + b_ref[...]


def add_layernorm(x2d, res2d, gamma, beta):
    """LayerNorm(x + residual) over the last dim (PyTorch nn.LayerNorm semantics)."""
    M, E = x2d.shape
    tm = min(512, _round_up(M, 8))
    Mp = _round_up(M, tm)
    xp = jnp.pad(x2d, ((0, Mp - M), (0, 0)))
    rp = jnp.pad(res2d, ((0, Mp - M), (0, 0)))
    out = pl.pallas_call(
        _add_ln_kernel,
        out_shape=jax.ShapeDtypeStruct((Mp, E), jnp.float32),
        grid=(Mp // tm,),
        in_specs=[
            pl.BlockSpec((tm, E), lambda i: (i, 0)),
            pl.BlockSpec((tm, E), lambda i: (i, 0)),
            pl.BlockSpec((1, E), lambda i: (0, 0)),
            pl.BlockSpec((1, E), lambda i: (0, 0)),
        ],
        out_specs=pl.BlockSpec((tm, E), lambda i: (i, 0)),
        compiler_params=pltpu.CompilerParams(
            dimension_semantics=("parallel",),
            vmem_limit_bytes=VMEM_LIMIT),
    )(xp, rp, gamma.reshape(1, E), beta.reshape(1, E))
    return out[:M]


# --------------------------------- attention ---------------------------------

def _attention_kernel(q_ref, k_ref, v_ref, pad_ref, o_ref, *,
                      head, dk, dv, scale, causal):
    q = q_ref[0].astype(jnp.bfloat16)     # (Lq, head*dk)
    k = k_ref[0].astype(jnp.bfloat16)     # (Lk, head*dk)
    v = v_ref[0].astype(jnp.bfloat16)     # (Lk, head*dv)
    Lq = q.shape[0]
    Lk = k.shape[0]
    key_masked = pad_ref[0] > 0.0         # (1, Lk) True where key token is PAD
    if causal:
        rows = lax.broadcasted_iota(jnp.int32, (Lq, Lk), 0)
        cols = lax.broadcasted_iota(jnp.int32, (Lq, Lk), 1)
        causal_masked = cols > rows       # built in-kernel: no mask HBM traffic

    outs = []
    for h in range(head):                 # static unroll: all heads per grid step
        qh = q[:, h * dk:(h + 1) * dk]
        kh = k[:, h * dk:(h + 1) * dk]
        vh = v[:, h * dv:(h + 1) * dv]
        # scores = q @ k^T * scale (contract last dims, f32 accumulation)
        s = lax.dot_general(qh, kh, (((1,), (1,)), ((), ())),
                            preferred_element_type=jnp.float32) * scale
        s = jnp.where(key_masked, NEG_INF, s)          # masked_fill(pad, -1e9)
        if causal:
            s = jnp.where(causal_masked, NEG_INF, s)
        # NOTE: fully-masked rows give a uniform softmax (matches PyTorch
        # masked_fill + softmax); such rows are ignored downstream.
        s = s - jnp.max(s, axis=-1, keepdims=True)
        p = jnp.exp(s)
        p = p * pl.reciprocal(jnp.sum(p, axis=-1, keepdims=True), approx=True)
        outs.append(jnp.dot(p.astype(jnp.bfloat16), vh,
                            preferred_element_type=jnp.float32))
    o_ref[0] = jnp.concatenate(outs, axis=-1)          # (Lq, head*dv)


def attention(q, k, v, key_pad, scale, head, causal):
    """q: (B, Lq, head*dk), k: (B, Lk, head*dk), v: (B, Lk, head*dv),
    key_pad: (B, 1, Lk) float (1.0 where the key position is a PAD token)."""
    B, Lq, dq = q.shape
    Lk = k.shape[1]
    dvh = v.shape[2]
    dk = dq // head
    dv = dvh // head
    Lqp, Lkp = _round_up(Lq, 8), _round_up(Lk, 8)
    if Lqp != Lq:
        q = jnp.pad(q, ((0, 0), (0, Lqp - Lq), (0, 0)))
    if Lkp != Lk:
        k = jnp.pad(k, ((0, 0), (0, Lkp - Lk), (0, 0)))
        v = jnp.pad(v, ((0, 0), (0, Lkp - Lk), (0, 0)))
        key_pad = jnp.pad(key_pad, ((0, 0), (0, 0), (0, Lkp - Lk)),
                          constant_values=1.0)          # padded keys are masked

    kern = functools.partial(_attention_kernel, head=head, dk=dk, dv=dv,
                             scale=scale, causal=causal)
    out = pl.pallas_call(
        kern,
        out_shape=jax.ShapeDtypeStruct((B, Lqp, dvh), jnp.float32),
        grid=(B,),
        in_specs=[
            pl.BlockSpec((1, Lqp, dq), lambda b: (b, 0, 0)),
            pl.BlockSpec((1, Lkp, dq), lambda b: (b, 0, 0)),
            pl.BlockSpec((1, Lkp, dvh), lambda b: (b, 0, 0)),
            pl.BlockSpec((1, 1, Lkp), lambda b: (b, 0, 0)),
        ],
        out_specs=pl.BlockSpec((1, Lqp, dvh), lambda b: (b, 0, 0)),
        compiler_params=pltpu.CompilerParams(
            dimension_semantics=("parallel",),
            vmem_limit_bytes=VMEM_LIMIT),
        cost_estimate=pl.CostEstimate(
            flops=2 * B * head * Lqp * Lkp * (dk + dv),
            transcendentals=B * head * Lqp * Lkp,
            bytes_accessed=(q.size + k.size + v.size + key_pad.size) * 4
                           + B * Lqp * dvh * 4),
    )(q, k, v, key_pad)
    return out[:, :Lq, :]


# ----------------------------- Model (glue) -----------------------------

def multi_head_attention(p, x_q, x_kv, key_pad, cfg, causal, self_attn):
    B, Lq, E = x_q.shape
    Lk = x_kv.shape[1]
    head, qk, vsz = cfg['head'], cfg['qk'], cfg['v']
    dq, dv = head * qk, head * vsz
    if self_attn:
        # Fused QKV projection: one HBM pass over x, one wide lane-dense matmul.
        w = jnp.concatenate([p['wq']['w'], p['wk']['w'], p['wv']['w']], axis=1)
        b = jnp.concatenate([p['wq']['b'], p['wk']['b'], p['wv']['b']], axis=0)
        qkv = linear(x_q.reshape(B * Lq, E), w, b)
        q, k, v = qkv[:, :dq], qkv[:, dq:2 * dq], qkv[:, 2 * dq:2 * dq + dv]
        Lk = Lq
    else:
        q = linear(x_q.reshape(B * Lq, E), p['wq']['w'], p['wq']['b'])
        wkv = jnp.concatenate([p['wk']['w'], p['wv']['w']], axis=1)
        bkv = jnp.concatenate([p['wk']['b'], p['wv']['b']], axis=0)
        kv = linear(x_kv.reshape(B * Lk, E), wkv, bkv)
        k, v = kv[:, :dq], kv[:, dq:dq + dv]
    # No head-split transposes: heads are sliced inside the attention kernel.
    q = q.reshape(B, Lq, dq)
    k = k.reshape(B, Lk, dq)
    v = v.reshape(B, Lk, dv)
    scale = 1.0 / float(np.sqrt(qk))
    return attention(q, k, v, key_pad, scale, head, causal)   # (B, Lq, head*v)


def encoder_block(p, x, key_pad, cfg):
    B, L, E = x.shape
    z = multi_head_attention(p['mha'], x, x, key_pad, cfg, causal=False, self_attn=True)
    z = linear(z.reshape(B * L, -1), p['z']['w'], p['z']['b'])
    out1 = add_layernorm(z, x.reshape(B * L, E), p['ln1']['g'], p['ln1']['b'])
    f = linear(out1, p['ff1']['w'], p['ff1']['b'], relu=True)
    f = linear(f, p['ff2']['w'], p['ff2']['b'])
    out2 = add_layernorm(f, out1, p['ln2']['g'], p['ln2']['b'])
    return out2.reshape(B, L, E)


def decoder_block(p, x, enc_z, pad_self, pad_cross, cfg):
    B, L, E = x.shape
    # masked (causal + key-pad) self-attention
    z = multi_head_attention(p['mha1'], x, x, pad_self, cfg, causal=True, self_attn=True)
    z = linear(z.reshape(B * L, -1), p['z1']['w'], p['z1']['b'])
    out1 = add_layernorm(z, x.reshape(B * L, E), p['ln1']['g'], p['ln1']['b'])
    out1_3d = out1.reshape(B, L, E)
    # cross-attention against encoder output (encoder key pads)
    z = multi_head_attention(p['mha2'], out1_3d, enc_z, pad_cross, cfg,
                             causal=False, self_attn=False)
    z = linear(z.reshape(B * L, -1), p['z2']['w'], p['z2']['b'])
    out2 = add_layernorm(z, out1, p['ln2']['g'], p['ln2']['b'])
    # feed-forward
    f = linear(out2, p['ff1']['w'], p['ff1']['b'], relu=True)
    f = linear(f, p['ff2']['w'], p['ff2']['b'])
    out3 = add_layernorm(f, out2, p['ln3']['g'], p['ln3']['b'])
    return out3.reshape(B, L, E)


def encode(params, encoder_x, cfg):
    B, S = encoder_x.shape
    key_pad = (encoder_x == PAD_IDX).astype(jnp.float32)[:, None, :]   # (B,1,S)
    x = params['enc_emb'][encoder_x] + params['pos_enc'][:S][None, :, :]
    for bp in params['enc_blocks']:
        x = encoder_block(bp, x, key_pad, cfg)
    return x


def decode(params, decoder_x, encoder_z, encoder_x, cfg):
    B, Ld = decoder_x.shape
    pad_d = (decoder_x == PAD_IDX).astype(jnp.float32)[:, None, :]     # (B,1,Ld)
    pad_e = (encoder_x == PAD_IDX).astype(jnp.float32)[:, None, :]     # (B,1,Ls)
    x = params['dec_emb'][decoder_x] + params['pos_enc'][:Ld][None, :, :]
    for bp in params['dec_blocks']:
        x = decoder_block(bp, x, encoder_z, pad_d, pad_e, cfg)
    E = x.shape[-1]
    logits = linear(x.reshape(B * Ld, E), params['out']['w'], params['out']['b'])
    return logits.reshape(B, Ld, -1)


def transformer_forward(params, encoder_x, decoder_x, cfg):
    encoder_z = encode(params, encoder_x, cfg)
    return decode(params, decoder_x, encoder_z, encoder_x, cfg)


# ----------------------------- Parameter init -----------------------------

def sinusoidal_pos_encoding(seq_max_len, emb_size):
    pos = np.arange(seq_max_len, dtype=np.float64)[:, None]
    div = np.exp(-np.arange(0, emb_size, 2, dtype=np.float64) * np.log(10000.0) / emb_size)
    pe = np.zeros((seq_max_len, emb_size), dtype=np.float64)
    pe[:, 0::2] = np.sin(pos * div)
    pe[:, 1::2] = np.cos(pos * div)
    return jnp.asarray(pe, dtype=jnp.float32)


def init_params(key, cfg):
    keys = iter(jax.random.split(key, 512))
    E, QK, V, F, H = cfg['emb'], cfg['qk'], cfg['v'], cfg['f'], cfg['head']

    def lin(din, dout):
        return {'w': jax.random.normal(next(keys), (din, dout), jnp.float32) * 0.02,
                'b': jnp.zeros((dout,), jnp.float32)}

    def ln(d):
        return {'g': jnp.ones((d,), jnp.float32), 'b': jnp.zeros((d,), jnp.float32)}

    def mha():
        return {'wq': lin(E, H * QK), 'wk': lin(E, H * QK), 'wv': lin(E, H * V)}

    def enc_block():
        return {'mha': mha(), 'z': lin(H * V, E), 'ln1': ln(E),
                'ff1': lin(E, F), 'ff2': lin(F, E), 'ln2': ln(E)}

    def dec_block():
        return {'mha1': mha(), 'z1': lin(H * V, E), 'ln1': ln(E),
                'mha2': mha(), 'z2': lin(H * V, E), 'ln2': ln(E),
                'ff1': lin(E, F), 'ff2': lin(F, E), 'ln3': ln(E)}

    return {
        'enc_emb': jax.random.normal(next(keys), (cfg['enc_vocab'], E), jnp.float32) * 0.02,
        'dec_emb': jax.random.normal(next(keys), (cfg['dec_vocab'], E), jnp.float32) * 0.02,
        'pos_enc': sinusoidal_pos_encoding(cfg['seq_max_len'], E),
        'enc_blocks': [enc_block() for _ in range(cfg['nblocks'])],
        'dec_blocks': [dec_block() for _ in range(cfg['nblocks'])],
        'out': lin(E, cfg['dec_vocab']),
    }


# ----------------------------- Main -----------------------------

if __name__ == "__main__":
    cfg = dict(enc_vocab=24, dec_vocab=20, emb=32, qk=16, v=16, f=64,
               head=2, nblocks=2, seq_max_len=64)
    B, S_ENC, S_DEC = 2, 8, 8

    root = jax.random.PRNGKey(0)
    k_params, k_enc, k_dec = jax.random.split(root, 3)

    params = init_params(k_params, cfg)

    encoder_x = jax.random.randint(k_enc, (B, S_ENC), 1, cfg['enc_vocab']).astype(jnp.int32)
    encoder_x = encoder_x.at[:, -2:].set(PAD_IDX)   # trailing pads
    decoder_x = jax.random.randint(k_dec, (B, S_DEC), 1, cfg['dec_vocab']).astype(jnp.int32)
    decoder_x = decoder_x.at[:, -1:].set(PAD_IDX)   # trailing pad

    fwd = jax.jit(functools.partial(transformer_forward, cfg=cfg))
    logits = fwd(params, encoder_x, decoder_x)
    logits = jax.block_until_ready(logits)

    assert logits.shape == (B, S_DEC, cfg['dec_vocab']), logits.shape
    assert logits.dtype == jnp.float32
    assert bool(jnp.all(jnp.isfinite(logits)))
    print("KERNEL_OK")
</pallas_src>

<mosaic_0001>
module attributes {stable_mosaic.version = 11 : i64} {
  func.func @_matmul_kernel(%arg0: i32, %arg1: i32, %arg2: i32, %arg3: memref<16x128xbf16, #tpu.memory_space<vmem>>, %arg4: memref<128x128xbf16, #tpu.memory_space<vmem>>, %arg5: memref<1x128xf32, #tpu.memory_space<vmem>>, %arg6: memref<16x128xf32, #tpu.memory_space<vmem>>, %arg7: memref<16x128xf32, #tpu.memory_space<vmem>>) attributes {dimension_semantics = [#tpu.dimension_semantics<parallel>, #tpu.dimension_semantics<parallel>, #tpu.dimension_semantics<arbitrary>], iteration_bounds = array<i64: 1, 1, 1>, scalar_prefetch = 0 : i64, scratch_operands = 1 : i64, tpu.core_type = #tpu.core_type<tc>, window_params = [{transform_indices = @transform_0, window_bounds = array<i64: 16, 128>}, {transform_indices = @transform_1, window_bounds = array<i64: 128, 128>}, {transform_indices = @transform_2, window_bounds = array<i64: 1, 128>}, {transform_indices = @transform_3, window_bounds = array<i64: 16, 128>}]} {
    %c0_i32 = arith.constant 0 : i32
    %0 = arith.cmpi eq, %arg2, %c0_i32 : i32
    %1 = arith.extui %0 : i1 to i32
    %c0_i32_0 = arith.constant 0 : i32
    %2 = arith.cmpi ne, %1, %c0_i32_0 : i32
    scf.if %2 {
      %cst_10 = arith.constant 0.000000e+00 : f32
      %12 = vector.broadcast %cst_10 : f32 to vector<16x128xf32>
      %c0_11 = arith.constant 0 : index
      %c0_12 = arith.constant 0 : index
      %13 = vector.load %arg7[%c0_11, %c0_12] : memref<16x128xf32, #tpu.memory_space<vmem>>, vector<16x128xf32>
      tpu.vector_store %arg7[%c0_11, %c0_12], %12 {strides = array<i32>} : memref<16x128xf32, #tpu.memory_space<vmem>>, vector<16x128xf32>,
    } else {
    }
    %c0 = arith.constant 0 : index
    %c0_1 = arith.constant 0 : index
    %3 = vector.load %arg7[%c0, %c0_1] : memref<16x128xf32, #tpu.memory_space<vmem>>, vector<16x128xf32>
    %c0_2 = arith.constant 0 : index
    %c0_3 = arith.constant 0 : index
    %4 = vector.load %arg3[%c0_2, %c0_3] : memref<16x128xbf16, #tpu.memory_space<vmem>>, vector<16x128xbf16>
    %c0_4 = arith.constant 0 : index
    %c0_5 = arith.constant 0 : index
    %5 = vector.load %arg4[%c0_4, %c0_5] : memref<128x128xbf16, #tpu.memory_space<vmem>>, vector<128x128xbf16>
    %cst = arith.constant dense<0.000000e+00> : vector<16x128xf32>
    %6 = tpu.matmul %4, %5, %cst {dimension_numbers = #tpu.dot_dimension_numbers<[1], [0], [0], [1], [0, 0, 1, 1], [], []>} : vector<16x128xbf16>, vector<128x128xbf16>, vector<16x128xf32> -> vector<16x128xf32>
    %7 = arith.addf %3, %6 : vector<16x128xf32>
    %c0_6 = arith.constant 0 : index
    %c0_7 = arith.constant 0 : index
    %8 = vector.load %arg7[%c0_6, %c0_7] : memref<16x128xf32, #tpu.memory_space<vmem>>, vector<16x128xf32>
    tpu.vector_store %arg7[%c0_6, %c0_7], %7 {strides = array<i32>} : memref<16x128xf32, #tpu.memory_space<vmem>>, vector<16x128xf32>,
    %c0_i32_8 = arith.constant 0 : i32
    %9 = arith.cmpi eq, %arg2, %c0_i32_8 : i32
    %10 = arith.extui %9 : i1 to i32
    %c0_i32_9 = arith.constant 0 : i32
    %11 = arith.cmpi ne, %10, %c0_i32_9 : i32
    scf.if %11 {
      %c0_10 = arith.constant 0 : index
      %c0_11 = arith.constant 0 : index
      %12 = vector.load %arg7[%c0_10, %c0_11] : memref<16x128xf32, #tpu.memory_space<vmem>>, vector<16x128xf32>
      %c0_12 = arith.constant 0 : index
      %c0_13 = arith.constant 0 : index
      %13 = vector.load %arg5[%c0_12, %c0_13] : memref<1x128xf32, #tpu.memory_space<vmem>>, vector<1x128xf32>
      %14 = vector.broadcast %13 : vector<1x128xf32> to vector<16x128xf32>
      %15 = arith.addf %12, %14 : vector<16x128xf32>
      %c0_14 = arith.constant 0 : index
      %c0_15 = arith.constant 0 : index
      %16 = vector.load %arg6[%c0_14, %c0_15] : memref<16x128xf32, #tpu.memory_space<vmem>>, vector<16x128xf32>
      tpu.vector_store %arg6[%c0_14, %c0_15], %15 {strides = array<i32>} : memref<16x128xf32, #tpu.memory_space<vmem>>, vector<16x128xf32>,
    } else {
    }
    return
  }
  func.func @transform_0(%arg0: i32, %arg1: i32, %arg2: i32) -> (i32, i32) {
    %c0_i32 = arith.constant 0 : i32
    return %arg0, %arg2 : i32, i32
  }
  func.func @transform_1(%arg0: i32, %arg1: i32, %arg2: i32) -> (i32, i32) {
    %c0_i32 = arith.constant 0 : i32
    return %arg2, %arg1 : i32, i32
  }
  func.func @transform_2(%arg0: i32, %arg1: i32, %arg2: i32) -> (i32, i32) {
    %c0_i32 = arith.constant 0 : i32
    %c0_i32_0 = arith.constant 0 : i32
    return %c0_i32, %arg1 : i32, i32
  }
  func.func @transform_3(%arg0: i32, %arg1: i32, %arg2: i32) -> (i32, i32) {
    %c0_i32 = arith.constant 0 : i32
    return %arg0, %arg1 : i32, i32
  }
}

module attributes {stable_mosaic.version = 11 : i64} {
  func.func @_attention_kernel(%arg0: i32, %arg1: memref<1x8x32xf32, #tpu.memory_space<vmem>>, %arg2: memref<1x8x32xf32, #tpu.memory_space<vmem>>, %arg3: memref<1x8x32xf32, #tpu.memory_space<vmem>>, %arg4: memref<1x1x8xf32, #tpu.memory_space<vmem>>, %arg5: memref<1x8x32xf32, #tpu.memory_space<vmem>>) attributes {dimension_semantics = [#tpu.dimension_semantics<parallel>], iteration_bounds = array<i64: 2>, scalar_prefetch = 0 : i64, scratch_operands = 0 : i64, tpu.core_type = #tpu.core_type<tc>, window_params = [{transform_indices = @transform_0, window_bounds = array<i64: 1, 8, 32>}, {transform_indices = @transform_1, window_bounds = array<i64: 1, 8, 32>}, {transform_indices = @transform_2, window_bounds = array<i64: 1, 8, 32>}, {transform_indices = @transform_3, window_bounds = array<i64: 1, 1, 8>}, {transform_indices = @transform_4, window_bounds = array<i64: 1, 8, 32>}]} {
    %c0 = arith.constant 0 : index
    %c0_0 = arith.constant 0 : index
    %c0_1 = arith.constant 0 : index
    %0 = vector.load %arg1[%c0, %c0_0, %c0_1] : memref<1x8x32xf32, #tpu.memory_space<vmem>>, vector<1x8x32xf32>
    %1 = vector.shape_cast %0 : vector<1x8x32xf32> to vector<8x32xf32>
    %2 = arith.truncf %1 : vector<8x32xf32> to vector<8x32xbf16>
    %c0_2 = arith.constant 0 : index
    %c0_3 = arith.constant 0 : index
    %c0_4 = arith.constant 0 : index
    %3 = vector.load %arg2[%c0_2, %c0_3, %c0_4] : memref<1x8x32xf32, #tpu.memory_space<vmem>>, vector<1x8x32xf32>
    %4 = vector.shape_cast %3 : vector<1x8x32xf32> to vector<8x32xf32>
    %5 = arith.truncf %4 : vector<8x32xf32> to vector<8x32xbf16>
    %c0_5 = arith.constant 0 : index
    %c0_6 = arith.constant 0 : index
    %c0_7 = arith.constant 0 : index
    %6 = vector.load %arg3[%c0_5, %c0_6, %c0_7] : memref<1x8x32xf32, #tpu.memory_space<vmem>>, vector<1x8x32xf32>
    %7 = vector.shape_cast %6 : vector<1x8x32xf32> to vector<8x32xf32>
    %8 = arith.truncf %7 : vector<8x32xf32> to vector<8x32xbf16>
    %c0_8 = arith.constant 0 : index
    %c0_9 = arith.constant 0 : index
    %c0_10 = arith.constant 0 : index
    %9 = vector.load %arg4[%c0_8, %c0_9, %c0_10] : memref<1x1x8xf32, #tpu.memory_space<vmem>>, vector<1x1x8xf32>
    %10 = vector.shape_cast %9 : vector<1x1x8xf32> to vector<1x8xf32>
    %cst = arith.constant 0.000000e+00 : f32
    %11 = vector.broadcast %cst : f32 to vector<1x8xf32>
    %12 = arith.cmpf ogt, %10, %11 : vector<1x8xf32>
    %13 = vector.extract_strided_slice %2 {offsets = [0, 0], sizes = [8, 16], strides = [1, 1]} : vector<8x32xbf16> to vector<8x16xbf16>
    %14 = vector.extract_strided_slice %5 {offsets = [0, 0], sizes = [8, 16], strides = [1, 1]} : vector<8x32xbf16> to vector<8x16xbf16>
    %15 = vector.extract_strided_slice %8 {offsets = [0, 0], sizes = [8, 16], strides = [1, 1]} : vector<8x32xbf16> to vector<8x16xbf16>
    %cst_11 = arith.constant dense<0.000000e+00> : vector<8x8xf32>
    %16 = tpu.matmul %13, %14, %cst_11 {dimension_numbers = #tpu.dot_dimension_numbers<[1], [1], [0], [0], [0, 0, 1, 0], [], []>} : vector<8x16xbf16>, vector<8x16xbf16>, vector<8x8xf32> -> vector<8x8xf32>
    %cst_12 = arith.constant 2.500000e-01 : f32
    %17 = vector.broadcast %cst_12 : f32 to vector<8x8xf32>
    %18 = arith.mulf %16, %17 : vector<8x8xf32>
    %cst_13 = arith.constant -1.000000e+09 : f32
    %19 = vector.shape_cast %12 : vector<1x8xi1> to vector<1x8xi1>
    %20 = vector.broadcast %19 : vector<1x8xi1> to vector<8x8xi1>
    %21 = vector.broadcast %cst_13 : f32 to vector<8x8xf32>
    %22 = arith.select %20, %21, %18 : vector<8x8xi1>, vector<8x8xf32>
    %cst_14 = arith.constant dense<0xFF800000> : vector<8xf32>
    %23 = vector.multi_reduction <maximumf>, %22, %cst_14 [1] : vector<8x8xf32> to vector<8xf32>
    %24 = vector.shape_cast %23 : vector<8xf32> to vector<8x1xf32>
    %25 = vector.broadcast %24 : vector<8x1xf32> to vector<8x8xf32>
    %26 = arith.subf %22, %25 : vector<8x8xf32>
    %27 = math.exp %26 : vector<8x8xf32>
    %cst_15 = arith.constant dense<0.000000e+00> : vector<8xf32>
    %28 = vector.multi_reduction <add>, %27, %cst_15 [1] : vector<8x8xf32> to vector<8xf32>
    %29 = vector.shape_cast %28 : vector<8xf32> to vector<8x1xf32>
    %30 = tpu.reciprocal %29 {approx = true} : vector<8x1xf32> -> vector<8x1xf32>
    %31 = vector.broadcast %30 : vector<8x1xf32> to vector<8x8xf32>
    %32 = arith.mulf %27, %31 : vector<8x8xf32>
    %33 = arith.truncf %32 : vector<8x8xf32> to vector<8x8xbf16>
    %cst_16 = arith.constant dense<0.000000e+00> : vector<8x16xf32>
    %34 = tpu.matmul %33, %15, %cst_16 {dimension_numbers = #tpu.dot_dimension_numbers<[1], [0], [0], [1], [0, 0, 1, 1], [], []>} : vector<8x8xbf16>, vector<8x16xbf16>, vector<8x16xf32> -> vector<8x16xf32>
    %35 = vector.extract_strided_slice %2 {offsets = [0, 16], sizes = [8, 16], strides = [1, 1]} : vector<8x32xbf16> to vector<8x16xbf16>
    %36 = vector.extract_strided_slice %5 {offsets = [0, 16], sizes = [8, 16], strides = [1, 1]} : vector<8x32xbf16> to vector<8x16xbf16>
    %37 = vector.extract_strided_slice %8 {offsets = [0, 16], sizes = [8, 16], strides = [1, 1]} : vector<8x32xbf16> to vector<8x16xbf16>
    %cst_17 = arith.constant dense<0.000000e+00> : vector<8x8xf32>
    %38 = tpu.matmul %35, %36, %cst_17 {dimension_numbers = #tpu.dot_dimension_numbers<[1], [1], [0], [0], [0, 0, 1, 0], [], []>} : vector<8x16xbf16>, vector<8x16xbf16>, vector<8x8xf32> -> vector<8x8xf32>
    %cst_18 = arith.constant 2.500000e-01 : f32
    %39 = vector.broadcast %cst_18 : f32 to vector<8x8xf32>
    %40 = arith.mulf %38, %39 : vector<8x8xf32>
    %cst_19 = arith.constant -1.000000e+09 : f32
    %41 = vector.shape_cast %12 : vector<1x8xi1> to vector<1x8xi1>
    %42 = vector.broadcast %41 : vector<1x8xi1> to vector<8x8xi1>
    %43 = vector.broadcast %cst_19 : f32 to vector<8x8xf32>
    %44 = arith.select %42, %43, %40 : vector<8x8xi1>, vector<8x8xf32>
    %cst_20 = arith.constant dense<0xFF800000> : vector<8xf32>
    %45 = vector.multi_reduction <maximumf>, %44, %cst_20 [1] : vector<8x8xf32> to vector<8xf32>
    %46 = vector.shape_cast %45 : vector<8xf32> to vector<8x1xf32>
    %47 = vector.broadcast %46 : vector<8x1xf32> to vector<8x8xf32>
    %48 = arith.subf %44, %47 : vector<8x8xf32>
    %49 = math.exp %48 : vector<8x8xf32>
    %cst_21 = arith.constant dense<0.000000e+00> : vector<8xf32>
    %50 = vector.multi_reduction <add>, %49, %cst_21 [1] : vector<8x8xf32> to vector<8xf32>
    %51 = vector.shape_cast %50 : vector<8xf32> to vector<8x1xf32>
    %52 = tpu.reciprocal %51 {approx = true} : vector<8x1xf32> -> vector<8x1xf32>
    %53 = vector.broadcast %52 : vector<8x1xf32> to vector<8x8xf32>
    %54 = arith.mulf %49, %53 : vector<8x8xf32>
    %55 = arith.truncf %54 : vector<8x8xf32> to vector<8x8xbf16>
    %cst_22 = arith.constant dense<0.000000e+00> : vector<8x16xf32>
    %56 = tpu.matmul %55, %37, %cst_22 {dimension_numbers = #tpu.dot_dimension_numbers<[1], [0], [0], [1], [0, 0, 1, 1], [], []>} : vector<8x8xbf16>, vector<8x16xbf16>, vector<8x16xf32> -> vector<8x16xf32>
    %57 = tpu.concatenate %34, %56 in 1 : vector<8x16xf32>, vector<8x16xf32> -> vector<8x32xf32>
    %c0_23 = arith.constant 0 : index
    %c0_24 = arith.constant 0 : index
    %c0_25 = arith.constant 0 : index
    %58 = vector.load %arg5[%c0_23, %c0_24, %c0_25] : memref<1x8x32xf32, #tpu.memory_space<vmem>>, vector<1x8x32xf32>
    %59 = vector.shape_cast %58 : vector<1x8x32xf32> to vector<8x32xf32>
    %60 = vector.shape_cast %57 : vector<8x32xf32> to vector<1x8x32xf32>
    tpu.vector_store %arg5[%c0_23, %c0_24, %c0_25], %60 {strides = array<i32>} : memref<1x8x32xf32, #tpu.memory_space<vmem>>, vector<1x8x32xf32>,
    return
  }
  func.func @transform_0(%arg0: i32) -> (i32, i32, i32) {
    %c0_i32 = arith.constant 0 : i32
    %c0_i32_0 = arith.constant 0 : i32
    %c0_i32_1 = arith.constant 0 : i32
    return %arg0, %c0_i32, %c0_i32_0 : i32, i32, i32
  }
  func.func @transform_1(%arg0: i32) -> (i32, i32, i32) {
    %c0_i32 = arith.constant 0 : i32
    %c0_i32_0 = arith.constant 0 : i32
    %c0_i32_1 = arith.constant 0 : i32
    return %arg0, %c0_i32, %c0_i32_0 : i32, i32, i32
  }
  func.func @transform_2(%arg0: i32) -> (i32, i32, i32) {
    %c0_i32 = arith.constant 0 : i32
    %c0_i32_0 = arith.constant 0 : i32
    %c0_i32_1 = arith.constant 0 : i32
    return %arg0, %c0_i32, %c0_i32_0 : i32, i32, i32
  }
  func.func @transform_3(%arg0: i32) -> (i32, i32, i32) {
    %c0_i32 = arith.constant 0 : i32
    %c0_i32_0 = arith.constant 0 : i32
    %c0_i32_1 = arith.constant 0 : i32
    return %arg0, %c0_i32, %c0_i32_0 : i32, i32, i32
  }
  func.func @transform_4(%arg0: i32) -> (i32, i32, i32) {
    %c0_i32 = arith.constant 0 : i32
    %c0_i32_0 = arith.constant 0 : i32
    %c0_i32_1 = arith.constant 0 : i32
    return %arg0, %c0_i32, %c0_i32_0 : i32, i32, i32
  }
}

module attributes {stable_mosaic.version = 11 : i64} {
  func.func @_add_ln_kernel(%arg0: i32, %arg1: memref<16x32xf32, #tpu.memory_space<vmem>>, %arg2: memref<16x32xf32, #tpu.memory_space<vmem>>, %arg3: memref<1x32xf32, #tpu.memory_space<vmem>>, %arg4: memref<1x32xf32, #tpu.memory_space<vmem>>, %arg5: memref<16x32xf32, #tpu.memory_space<vmem>>) attributes {dimension_semantics = [#tpu.dimension_semantics<parallel>], iteration_bounds = array<i64: 1>, scalar_prefetch = 0 : i64, scratch_operands = 0 : i64, tpu.core_type = #tpu.core_type<tc>, window_params = [{transform_indices = @transform_0, window_bounds = array<i64: 16, 32>}, {transform_indices = @transform_1, window_bounds = array<i64: 16, 32>}, {pipeline_mode = #tpu.pipeline_mode<synchronous>, transform_indices = @transform_2, window_bounds = array<i64: 1, 32>}, {pipeline_mode = #tpu.pipeline_mode<synchronous>, transform_indices = @transform_3, window_bounds = array<i64: 1, 32>}, {transform_indices = @transform_4, window_bounds = array<i64: 16, 32>}]} {
    %c0 = arith.constant 0 : index
    %c0_0 = arith.constant 0 : index
    %0 = vector.load %arg1[%c0, %c0_0] : memref<16x32xf32, #tpu.memory_space<vmem>>, vector<16x32xf32>
    %c0_1 = arith.constant 0 : index
    %c0_2 = arith.constant 0 : index
    %1 = vector.load %arg2[%c0_1, %c0_2] : memref<16x32xf32, #tpu.memory_space<vmem>>, vector<16x32xf32>
    %2 = arith.addf %0, %1 : vector<16x32xf32>
    %cst = arith.constant dense<0.000000e+00> : vector<16xf32>
    %3 = vector.multi_reduction <add>, %2, %cst [1] : vector<16x32xf32> to vector<16xf32>
    %4 = vector.shape_cast %3 : vector<16xf32> to vector<16x1xf32>
    %cst_3 = arith.constant 3.200000e+01 : f32
    %5 = vector.broadcast %cst_3 : f32 to vector<16x1xf32>
    %6 = arith.divf %4, %5 : vector<16x1xf32>
    %7 = vector.broadcast %6 : vector<16x1xf32> to vector<16x32xf32>
    %8 = arith.subf %2, %7 : vector<16x32xf32>
    %9 = arith.mulf %8, %8 : vector<16x32xf32>
    %cst_4 = arith.constant dense<0.000000e+00> : vector<16xf32>
    %10 = vector.multi_reduction <add>, %9, %cst_4 [1] : vector<16x32xf32> to vector<16xf32>
    %11 = vector.shape_cast %10 : vector<16xf32> to vector<16x1xf32>
    %cst_5 = arith.constant 3.200000e+01 : f32
    %12 = vector.broadcast %cst_5 : f32 to vector<16x1xf32>
    %13 = arith.divf %11, %12 : vector<16x1xf32>
    %14 = vector.broadcast %6 : vector<16x1xf32> to vector<16x32xf32>
    %15 = arith.subf %2, %14 : vector<16x32xf32>
    %cst_6 = arith.constant 9.99999974E-6 : f32
    %16 = vector.broadcast %cst_6 : f32 to vector<16x1xf32>
    %17 = arith.addf %13, %16 : vector<16x1xf32>
    %18 = math.rsqrt %17 : vector<16x1xf32>
    %19 = vector.broadcast %18 : vector<16x1xf32> to vector<16x32xf32>
    %20 = arith.mulf %15, %19 : vector<16x32xf32>
    %c0_7 = arith.constant 0 : index
    %c0_8 = arith.constant 0 : index
    %21 = vector.load %arg3[%c0_7, %c0_8] : memref<1x32xf32, #tpu.memory_space<vmem>>, vector<1x32xf32>
    %22 = vector.broadcast %21 : vector<1x32xf32> to vector<16x32xf32>
    %23 = arith.mulf %20, %22 : vector<16x32xf32>
    %c0_9 = arith.constant 0 : index
    %c0_10 = arith.constant 0 : index
    %24 = vector.load %arg4[%c0_9, %c0_10] : memref<1x32xf32, #tpu.memory_space<vmem>>, vector<1x32xf32>
    %25 = vector.broadcast %24 : vector<1x32xf32> to vector<16x32xf32>
    %26 = arith.addf %23, %25 : vector<16x32xf32>
    %c0_11 = arith.constant 0 : index
    %c0_12 = arith.constant 0 : index
    %27 = vector.load %arg5[%c0_11, %c0_12] : memref<16x32xf32, #tpu.memory_space<vmem>>, vector<16x32xf32>
    tpu.vector_store %arg5[%c0_11, %c0_12], %26 {strides = array<i32>} : memref<16x32xf32, #tpu.memory_space<vmem>>, vector<16x32xf32>,
    return
  }
  func.func @transform_0(%arg0: i32) -> (i32, i32) {
    %c0_i32 = arith.constant 0 : i32
    %c0_i32_0 = arith.constant 0 : i32
    return %arg0, %c0_i32 : i32, i32
  }
  func.func @transform_1(%arg0: i32) -> (i32, i32) {
    %c0_i32 = arith.constant 0 : i32
    %c0_i32_0 = arith.constant 0 : i32
    return %arg0, %c0_i32 : i32, i32
  }
  func.func @transform_2(%arg0: i32) -> (i32, i32) {
    %c0_i32 = arith.constant 0 : i32
    %c0_i32_0 = arith.constant 0 : i32
    %c0_i32_1 = arith.constant 0 : i32
    return %c0_i32, %c0_i32_0 : i32, i32
  }
  func.func @transform_3(%arg0: i32) -> (i32, i32) {
    %c0_i32 = arith.constant 0 : i32
    %c0_i32_0 = arith.constant 0 : i32
    %c0_i32_1 = arith.constant 0 : i32
    return %c0_i32, %c0_i32_0 : i32, i32
  }
  func.func @transform_4(%arg0: i32) -> (i32, i32) {
    %c0_i32 = arith.constant 0 : i32
    %c0_i32_0 = arith.constant 0 : i32
    return %arg0, %c0_i32 : i32, i32
  }
}

module attributes {stable_mosaic.version = 11 : i64} {
  func.func @_matmul_kernel(%arg0: i32, %arg1: i32, %arg2: i32, %arg3: memref<16x128xbf16, #tpu.memory_space<vmem>>, %arg4: memref<128x128xbf16, #tpu.memory_space<vmem>>, %arg5: memref<1x128xf32, #tpu.memory_space<vmem>>, %arg6: memref<16x128xf32, #tpu.memory_space<vmem>>, %arg7: memref<16x128xf32, #tpu.memory_space<vmem>>) attributes {dimension_semantics = [#tpu.dimension_semantics<parallel>, #tpu.dimension_semantics<parallel>, #tpu.dimension_semantics<arbitrary>], iteration_bounds = array<i64: 1, 1, 1>, scalar_prefetch = 0 : i64, scratch_operands = 1 : i64, tpu.core_type = #tpu.core_type<tc>, window_params = [{transform_indices = @transform_0, window_bounds = array<i64: 16, 128>}, {transform_indices = @transform_1, window_bounds = array<i64: 128, 128>}, {transform_indices = @transform_2, window_bounds = array<i64: 1, 128>}, {transform_indices = @transform_3, window_bounds = array<i64: 16, 128>}]} {
    %c0_i32 = arith.constant 0 : i32
    %0 = arith.cmpi eq, %arg2, %c0_i32 : i32
    %1 = arith.extui %0 : i1 to i32
    %c0_i32_0 = arith.constant 0 : i32
    %2 = arith.cmpi ne, %1, %c0_i32_0 : i32
    scf.if %2 {
      %cst_10 = arith.constant 0.000000e+00 : f32
      %12 = vector.broadcast %cst_10 : f32 to vector<16x128xf32>
      %c0_11 = arith.constant 0 : index
      %c0_12 = arith.constant 0 : index
      %13 = vector.load %arg7[%c0_11, %c0_12] : memref<16x128xf32, #tpu.memory_space<vmem>>, vector<16x128xf32>
      tpu.vector_store %arg7[%c0_11, %c0_12], %12 {strides = array<i32>} : memref<16x128xf32, #tpu.memory_space<vmem>>, vector<16x128xf32>,
    } else {
    }
    %c0 = arith.constant 0 : index
    %c0_1 = arith.constant 0 : index
    %3 = vector.load %arg7[%c0, %c0_1] : memref<16x128xf32, #tpu.memory_space<vmem>>, vector<16x128xf32>
    %c0_2 = arith.constant 0 : index
    %c0_3 = arith.constant 0 : index
    %4 = vector.load %arg3[%c0_2, %c0_3] : memref<16x128xbf16, #tpu.memory_space<vmem>>, vector<16x128xbf16>
    %c0_4 = arith.constant 0 : index
    %c0_5 = arith.constant 0 : index
    %5 = vector.load %arg4[%c0_4, %c0_5] : memref<128x128xbf16, #tpu.memory_space<vmem>>, vector<128x128xbf16>
    %cst = arith.constant dense<0.000000e+00> : vector<16x128xf32>
    %6 = tpu.matmul %4, %5, %cst {dimension_numbers = #tpu.dot_dimension_numbers<[1], [0], [0], [1], [0, 0, 1, 1], [], []>} : vector<16x128xbf16>, vector<128x128xbf16>, vector<16x128xf32> -> vector<16x128xf32>
    %7 = arith.addf %3, %6 : vector<16x128xf32>
    %c0_6 = arith.constant 0 : index
    %c0_7 = arith.constant 0 : index
    %8 = vector.load %arg7[%c0_6, %c0_7] : memref<16x128xf32, #tpu.memory_space<vmem>>, vector<16x128xf32>
    tpu.vector_store %arg7[%c0_6, %c0_7], %7 {strides = array<i32>} : memref<16x128xf32, #tpu.memory_space<vmem>>, vector<16x128xf32>,
    %c0_i32_8 = arith.constant 0 : i32
    %9 = arith.cmpi eq, %arg2, %c0_i32_8 : i32
    %10 = arith.extui %9 : i1 to i32
    %c0_i32_9 = arith.constant 0 : i32
    %11 = arith.cmpi ne, %10, %c0_i32_9 : i32
    scf.if %11 {
      %c0_10 = arith.constant 0 : index
      %c0_11 = arith.constant 0 : index
      %12 = vector.load %arg7[%c0_10, %c0_11] : memref<16x128xf32, #tpu.memory_space<vmem>>, vector<16x128xf32>
      %c0_12 = arith.constant 0 : index
      %c0_13 = arith.constant 0 : index
      %13 = vector.load %arg5[%c0_12, %c0_13] : memref<1x128xf32, #tpu.memory_space<vmem>>, vector<1x128xf32>
      %14 = vector.broadcast %13 : vector<1x128xf32> to vector<16x128xf32>
      %15 = arith.addf %12, %14 : vector<16x128xf32>
      %cst_14 = arith.constant 0.000000e+00 : f32
      %16 = vector.broadcast %cst_14 : f32 to vector<16x128xf32>
      %17 = arith.maximumf %15, %16 : vector<16x128xf32>
      %c0_15 = arith.constant 0 : index
      %c0_16 = arith.constant 0 : index
      %18 = vector.load %arg6[%c0_15, %c0_16] : memref<16x128xf32, #tpu.memory_space<vmem>>, vector<16x128xf32>
      tpu.vector_store %arg6[%c0_15, %c0_16], %17 {strides = array<i32>} : memref<16x128xf32, #tpu.memory_space<vmem>>, vector<16x128xf32>,
    } else {
    }
    return
  }
  func.func @transform_0(%arg0: i32, %arg1: i32, %arg2: i32) -> (i32, i32) {
    %c0_i32 = arith.constant 0 : i32
    return %arg0, %arg2 : i32, i32
  }
  func.func @transform_1(%arg0: i32, %arg1: i32, %arg2: i32) -> (i32, i32) {
    %c0_i32 = arith.constant 0 : i32
    return %arg2, %arg1 : i32, i32
  }
  func.func @transform_2(%arg0: i32, %arg1: i32, %arg2: i32) -> (i32, i32) {
    %c0_i32 = arith.constant 0 : i32
    %c0_i32_0 = arith.constant 0 : i32
    return %c0_i32, %arg1 : i32, i32
  }
  func.func @transform_3(%arg0: i32, %arg1: i32, %arg2: i32) -> (i32, i32) {
    %c0_i32 = arith.constant 0 : i32
    return %arg0, %arg1 : i32, i32
  }
}

module attributes {stable_mosaic.version = 11 : i64} {
  func.func @_attention_kernel(%arg0: i32, %arg1: memref<1x8x32xf32, #tpu.memory_space<vmem>>, %arg2: memref<1x8x32xf32, #tpu.memory_space<vmem>>, %arg3: memref<1x8x32xf32, #tpu.memory_space<vmem>>, %arg4: memref<1x1x8xf32, #tpu.memory_space<vmem>>, %arg5: memref<1x8x32xf32, #tpu.memory_space<vmem>>) attributes {dimension_semantics = [#tpu.dimension_semantics<parallel>], iteration_bounds = array<i64: 2>, scalar_prefetch = 0 : i64, scratch_operands = 0 : i64, tpu.core_type = #tpu.core_type<tc>, window_params = [{transform_indices = @transform_0, window_bounds = array<i64: 1, 8, 32>}, {transform_indices = @transform_1, window_bounds = array<i64: 1, 8, 32>}, {transform_indices = @transform_2, window_bounds = array<i64: 1, 8, 32>}, {transform_indices = @transform_3, window_bounds = array<i64: 1, 1, 8>}, {transform_indices = @transform_4, window_bounds = array<i64: 1, 8, 32>}]} {
    %c0 = arith.constant 0 : index
    %c0_0 = arith.constant 0 : index
    %c0_1 = arith.constant 0 : index
    %0 = vector.load %arg1[%c0, %c0_0, %c0_1] : memref<1x8x32xf32, #tpu.memory_space<vmem>>, vector<1x8x32xf32>
    %1 = vector.shape_cast %0 : vector<1x8x32xf32> to vector<8x32xf32>
    %2 = arith.truncf %1 : vector<8x32xf32> to vector<8x32xbf16>
    %c0_2 = arith.constant 0 : index
    %c0_3 = arith.constant 0 : index
    %c0_4 = arith.constant 0 : index
    %3 = vector.load %arg2[%c0_2, %c0_3, %c0_4] : memref<1x8x32xf32, #tpu.memory_space<vmem>>, vector<1x8x32xf32>
    %4 = vector.shape_cast %3 : vector<1x8x32xf32> to vector<8x32xf32>
    %5 = arith.truncf %4 : vector<8x32xf32> to vector<8x32xbf16>
    %c0_5 = arith.constant 0 : index
    %c0_6 = arith.constant 0 : index
    %c0_7 = arith.constant 0 : index
    %6 = vector.load %arg3[%c0_5, %c0_6, %c0_7] : memref<1x8x32xf32, #tpu.memory_space<vmem>>, vector<1x8x32xf32>
    %7 = vector.shape_cast %6 : vector<1x8x32xf32> to vector<8x32xf32>
    %8 = arith.truncf %7 : vector<8x32xf32> to vector<8x32xbf16>
    %c0_8 = arith.constant 0 : index
    %c0_9 = arith.constant 0 : index
    %c0_10 = arith.constant 0 : index
    %9 = vector.load %arg4[%c0_8, %c0_9, %c0_10] : memref<1x1x8xf32, #tpu.memory_space<vmem>>, vector<1x1x8xf32>
    %10 = vector.shape_cast %9 : vector<1x1x8xf32> to vector<1x8xf32>
    %cst = arith.constant 0.000000e+00 : f32
    %11 = vector.broadcast %cst : f32 to vector<1x8xf32>
    %12 = arith.cmpf ogt, %10, %11 : vector<1x8xf32>
    %13 = tpu.iota {dimensions = array<i32: 0>} : vector<8x8xi32>
    %14 = tpu.iota {dimensions = array<i32: 1>} : vector<8x8xi32>
    %15 = arith.cmpi sgt, %14, %13 : vector<8x8xi32>
    %16 = vector.extract_strided_slice %2 {offsets = [0, 0], sizes = [8, 16], strides = [1, 1]} : vector<8x32xbf16> to vector<8x16xbf16>
    %17 = vector.extract_strided_slice %5 {offsets = [0, 0], sizes = [8, 16], strides = [1, 1]} : vector<8x32xbf16> to vector<8x16xbf16>
    %18 = vector.extract_strided_slice %8 {offsets = [0, 0], sizes = [8, 16], strides = [1, 1]} : vector<8x32xbf16> to vector<8x16xbf16>
    %cst_11 = arith.constant dense<0.000000e+00> : vector<8x8xf32>
    %19 = tpu.matmul %16, %17, %cst_11 {dimension_numbers = #tpu.dot_dimension_numbers<[1], [1], [0], [0], [0, 0, 1, 0], [], []>} : vector<8x16xbf16>, vector<8x16xbf16>, vector<8x8xf32> -> vector<8x8xf32>
    %cst_12 = arith.constant 2.500000e-01 : f32
    %20 = vector.broadcast %cst_12 : f32 to vector<8x8xf32>
    %21 = arith.mulf %19, %20 : vector<8x8xf32>
    %cst_13 = arith.constant -1.000000e+09 : f32
    %22 = vector.shape_cast %12 : vector<1x8xi1> to vector<1x8xi1>
    %23 = vector.broadcast %22 : vector<1x8xi1> to vector<8x8xi1>
    %24 = vector.broadcast %cst_13 : f32 to vector<8x8xf32>
    %25 = arith.select %23, %24, %21 : vector<8x8xi1>, vector<8x8xf32>
    %cst_14 = arith.constant -1.000000e+09 : f32
    %26 = vector.broadcast %cst_14 : f32 to vector<8x8xf32>
    %27 = arith.select %15, %26, %25 : vector<8x8xi1>, vector<8x8xf32>
    %cst_15 = arith.constant dense<0xFF800000> : vector<8xf32>
    %28 = vector.multi_reduction <maximumf>, %27, %cst_15 [1] : vector<8x8xf32> to vector<8xf32>
    %29 = vector.shape_cast %28 : vector<8xf32> to vector<8x1xf32>
    %30 = vector.broadcast %29 : vector<8x1xf32> to vector<8x8xf32>
    %31 = arith.subf %27, %30 : vector<8x8xf32>
    %32 = math.exp %31 : vector<8x8xf32>
    %cst_16 = arith.constant dense<0.000000e+00> : vector<8xf32>
    %33 = vector.multi_reduction <add>, %32, %cst_16 [1] : vector<8x8xf32> to vector<8xf32>
    %34 = vector.shape_cast %33 : vector<8xf32> to vector<8x1xf32>
    %35 = tpu.reciprocal %34 {approx = true} : vector<8x1xf32> -> vector<8x1xf32>
    %36 = vector.broadcast %35 : vector<8x1xf32> to vector<8x8xf32>
    %37 = arith.mulf %32, %36 : vector<8x8xf32>
    %38 = arith.truncf %37 : vector<8x8xf32> to vector<8x8xbf16>
    %cst_17 = arith.constant dense<0.000000e+00> : vector<8x16xf32>
    %39 = tpu.matmul %38, %18, %cst_17 {dimension_numbers = #tpu.dot_dimension_numbers<[1], [0], [0], [1], [0, 0, 1, 1], [], []>} : vector<8x8xbf16>, vector<8x16xbf16>, vector<8x16xf32> -> vector<8x16xf32>
    %40 = vector.extract_strided_slice %2 {offsets = [0, 16], sizes = [8, 16], strides = [1, 1]} : vector<8x32xbf16> to vector<8x16xbf16>
    %41 = vector.extract_strided_slice %5 {offsets = [0, 16], sizes = [8, 16], strides = [1, 1]} : vector<8x32xbf16> to vector<8x16xbf16>
    %42 = vector.extract_strided_slice %8 {offsets = [0, 16], sizes = [8, 16], strides = [1, 1]} : vector<8x32xbf16> to vector<8x16xbf16>
    %cst_18 = arith.constant dense<0.000000e+00> : vector<8x8xf32>
    %43 = tpu.matmul %40, %41, %cst_18 {dimension_numbers = #tpu.dot_dimension_numbers<[1], [1], [0], [0], [0, 0, 1, 0], [], []>} : vector<8x16xbf16>, vector<8x16xbf16>, vector<8x8xf32> -> vector<8x8xf32>
    %cst_19 = arith.constant 2.500000e-01 : f32
    %44 = vector.broadcast %cst_19 : f32 to vector<8x8xf32>
    %45 = arith.mulf %43, %44 : vector<8x8xf32>
    %cst_20 = arith.constant -1.000000e+09 : f32
    %46 = vector.shape_cast %12 : vector<1x8xi1> to vector<1x8xi1>
    %47 = vector.broadcast %46 : vector<1x8xi1> to vector<8x8xi1>
    %48 = vector.broadcast %cst_20 : f32 to vector<8x8xf32>
    %49 = arith.select %47, %48, %45 : vector<8x8xi1>, vector<8x8xf32>
    %cst_21 = arith.constant -1.000000e+09 : f32
    %50 = vector.broadcast %cst_21 : f32 to vector<8x8xf32>
    %51 = arith.select %15, %50, %49 : vector<8x8xi1>, vector<8x8xf32>
    %cst_22 = arith.constant dense<0xFF800000> : vector<8xf32>
    %52 = vector.multi_reduction <maximumf>, %51, %cst_22 [1] : vector<8x8xf32> to vector<8xf32>
    %53 = vector.shape_cast %52 : vector<8xf32> to vector<8x1xf32>
    %54 = vector.broadcast %53 : vector<8x1xf32> to vector<8x8xf32>
    %55 = arith.subf %51, %54 : vector<8x8xf32>
    %56 = math.exp %55 : vector<8x8xf32>
    %cst_23 = arith.constant dense<0.000000e+00> : vector<8xf32>
    %57 = vector.multi_reduction <add>, %56, %cst_23 [1] : vector<8x8xf32> to vector<8xf32>
    %58 = vector.shape_cast %57 : vector<8xf32> to vector<8x1xf32>
    %59 = tpu.reciprocal %58 {approx = true} : vector<8x1xf32> -> vector<8x1xf32>
    %60 = vector.broadcast %59 : vector<8x1xf32> to vector<8x8xf32>
    %61 = arith.mulf %56, %60 : vector<8x8xf32>
    %62 = arith.truncf %61 : vector<8x8xf32> to vector<8x8xbf16>
    %cst_24 = arith.constant dense<0.000000e+00> : vector<8x16xf32>
    %63 = tpu.matmul %62, %42, %cst_24 {dimension_numbers = #tpu.dot_dimension_numbers<[1], [0], [0], [1], [0, 0, 1, 1], [], []>} : vector<8x8xbf16>, vector<8x16xbf16>, vector<8x16xf32> -> vector<8x16xf32>
    %64 = tpu.concatenate %39, %63 in 1 : vector<8x16xf32>, vector<8x16xf32> -> vector<8x32xf32>
    %c0_25 = arith.constant 0 : index
    %c0_26 = arith.constant 0 : index
    %c0_27 = arith.constant 0 : index
    %65 = vector.load %arg5[%c0_25, %c0_26, %c0_27] : memref<1x8x32xf32, #tpu.memory_space<vmem>>, vector<1x8x32xf32>
    %66 = vector.shape_cast %65 : vector<1x8x32xf32> to vector<8x32xf32>
    %67 = vector.shape_cast %64 : vector<8x32xf32> to vector<1x8x32xf32>
    tpu.vector_store %arg5[%c0_25, %c0_26, %c0_27], %67 {strides = array<i32>} : memref<1x8x32xf32, #tpu.memory_space<vmem>>, vector<1x8x32xf32>,
    return
  }
  func.func @transform_0(%arg0: i32) -> (i32, i32, i32) {
    %c0_i32 = arith.constant 0 : i32
    %c0_i32_0 = arith.constant 0 : i32
    %c0_i32_1 = arith.constant 0 : i32
    return %arg0, %c0_i32, %c0_i32_0 : i32, i32, i32
  }
  func.func @transform_1(%arg0: i32) -> (i32, i32, i32) {
    %c0_i32 = arith.constant 0 : i32
    %c0_i32_0 = arith.constant 0 : i32
    %c0_i32_1 = arith.constant 0 : i32
    return %arg0, %c0_i32, %c0_i32_0 : i32, i32, i32
  }
  func.func @transform_2(%arg0: i32) -> (i32, i32, i32) {
    %c0_i32 = arith.constant 0 : i32
    %c0_i32_0 = arith.constant 0 : i32
    %c0_i32_1 = arith.constant 0 : i32
    return %arg0, %c0_i32, %c0_i32_0 : i32, i32, i32
  }
  func.func @transform_3(%arg0: i32) -> (i32, i32, i32) {
    %c0_i32 = arith.constant 0 : i32
    %c0_i32_0 = arith.constant 0 : i32
    %c0_i32_1 = arith.constant 0 : i32
    return %arg0, %c0_i32, %c0_i32_0 : i32, i32, i32
  }
  func.func @transform_4(%arg0: i32) -> (i32, i32, i32) {
    %c0_i32 = arith.constant 0 : i32
    %c0_i32_0 = arith.constant 0 : i32
    %c0_i32_1 = arith.constant 0 : i32
    return %arg0, %c0_i32, %c0_i32_0 : i32, i32, i32
  }
}

</mosaic_0001>

<bundles_post_ra>
// kernel: transformer_forward.42
= control target key start
LH: loop header
LB: loop body
LE: loop exit
PB: predicated region body
PF: predicated region fallthrough
CT: control target
= control target key end

     0   :  { %vm23_vm0 = vcmask 261120   ;;  %s136_s0 = inlined_call_operand.vmem [shape: f32[16,32], index: 0, kind: input, shape index: {}]   ;;  %s137_s1 = inlined_call_operand.vmem [shape: f32[16,32], index: 1, kind: input, shape index: {}]   ;;  %s138_s2 = inlined_call_operand.vmem [shape: f32[1,32], index: 2, kind: input, shape index: {}]   ;;  %s139_s3 = inlined_call_operand.vmem [shape: f32[1,32], index: 3, kind: input, shape index: {}]   ;;  %s140_s4 = inlined_call_operand.vmem [shape: f32[16,32], index: 4, kind: output, shape index: {}]  }
   0x1   :  { %v17_v0 = vld [vmem:[%s136_s0] sm:$0xff]  ;;  %v18_v2 = vld [vmem:[%s136_s0 + $0x8] sm:$0xff] }
   0x2   :  { %v19_v1 = vld [vmem:[%s137_s1] sm:$0xff]  ;;  %v20_v4 = vld [vmem:[%s137_s1 + $0x8] sm:$0xff] }
   0x3   :  { %v21_v3 = vadd.f32 %v19_v1, %v17_v0  ;;  %v22_v5 = vadd.f32 %v20_v4, %v18_v2  ;;  %v75_v25 = vld [vmem:[%s138_s2] ss:$0 sm:$0xff] }
   0x4   :  { %v76_v27 = vld [vmem:[%s139_s3] ss:$0 sm:$0xff] }
   0x5   :  { %v24_v6 = vsel %vm23_vm0, %v21_v3, 0.0  ;;  %v27_v7 = vsel %vm23_vm0, %v22_v5, 0.0 }
   0x6   :  { %25 = vadd.xlane.f32.xlu0 %v24_v6 }
   0xa   :  { %28 = vadd.xlane.f32.xlu0 %v27_v7 }
  0x8f   :  { %v26_v8 = vpop.xlane.xlu0 %25 }
  0x90   :  { %v31_v9 = vmul.f32 0.03125, %v26_v8 }
  0x92   :  { %v33_v10 = vsub.f32 %v21_v3, %v31_v9 }
  0x93   :  { %v29_v11 = vpop.xlane.xlu0 %28 }
  0x94   :  { %v32_v12 = vmul.f32 0.03125, %v29_v11  ;;  %v35_v13 = vmul.f32 %v33_v10, %v33_v10 }
  0x96   :  { %v34_v14 = vsub.f32 %v22_v5, %v32_v12  ;;  %v37_v15 = vsel %vm23_vm0, %v35_v13, 0.0 }
  0x97   :  { %38 = vadd.xlane.f32.xlu1 %v37_v15 }
  0x98   :  { %v36_v16 = vmul.f32 %v34_v14, %v34_v14 }
  0x9a   :  { %v40_v17 = vsel %vm23_vm0, %v36_v16, 0.0 }
  0x9b   :  { %41 = vadd.xlane.f32.xlu1 %v40_v17 }
 0x120   :  { %v39_v18 = vpop.xlane.xlu1 %38 }
 0x121   :  { %v43_v19 = vmul.f32 0.03125, %v39_v18 }
 0x123   :  { %v45_v20 = vadd.f32 1e-05, %v43_v19 }
 0x124   :  { %v42_v21 = vpop.xlane.xlu1 %41 }
 0x125   :  { %77 = vrsqrt.f32 %v45_v20  ;;  %v44_v22 = vmul.f32 0.03125, %v42_v21 }
 0x127   :  { %v46_v23 = vadd.f32 1e-05, %v44_v22 }
 0x129   :  { %79 = vrsqrt.f32 %v46_v23 }
 0x132   :  { %v78_v24 = vpop.eup %77 }
 0x133   :  { %v49_v26 = vmul.f32 %v78_v24, %v33_v10 }
 0x135   :  { %v58_v28 = vmul.f32 %v75_v25, %v49_v26 }
 0x136   :  { %v80_v29 = vpop.eup %79 }
 0x137   :  { %v67_v30 = vadd.f32 %v76_v27, %v58_v28  ;;  %v50_v31 = vmul.f32 %v80_v29, %v34_v14 }
 0x139   :  { %69 = vst.msk [vmem:[%s140_s4] sm:$0xff] %vm23_vm0, %v67_v30  ;;  %v59_v32 = vmul.f32 %v75_v25, %v50_v31 }
 0x13b   :  { %v68_v33 = vadd.f32 %v76_v27, %v59_v32 }
 0x13d   :  { %70 = vst.msk [vmem:[%s140_s4 + $0x8] sm:$0xff] %vm23_vm0, %v68_v33 }

// kernel: transformer_forward.39
= control target key start
LH: loop header
LB: loop body
LE: loop exit
PB: predicated region body
PF: predicated region fallthrough
CT: control target
= control target key end

     0   :  { %v210_v0 = vmov 0.0   ;;  %vm211_vm0 = vmmov 0   ;;  %s268_s1 = inlined_call_operand.vmem [shape: bf16[128,128], index: 1, kind: input, shape index: {}]   ;;  %s269_s0 = inlined_call_operand.vmem [shape: bf16[16,128], index: 0, kind: input, shape index: {}]   ;;  %s270_s2 = inlined_call_operand.vmem [shape: f32[1,128], index: 2, kind: input, shape index: {}]   ;;  %s271_s3 = inlined_call_operand.vmem [shape: f32[16,128], index: 3, kind: output, shape index: {}]  }
   0x1   :  { %179 = vmatprep.subr.bf16.mxu0 %v210_v0  ;;  %v201_v1 = vld [vmem:[%s268_s1 + $0x38] sm:$0xff]   ;;  %195 = vmatprep.mubr.msk.bf16.mxu0 %vm211_vm0, %v210_v0  ;;  %v202_v2 = vld [vmem:[%s268_s1 + $0x30] sm:$0xff]   ;;  %v203_v3 = vld [vmem:[%s268_s1 + $0x28] sm:$0xff]  }
   0x2   :  { %180 = vmatpush3.bf16.msra.mxu0 %v201_v1  ;;  %v204_v4 = vld [vmem:[%s268_s1 + $0x20] sm:$0xff]   ;;  %v205_v5 = vld [vmem:[%s268_s1 + $0x18] sm:$0xff]   ;;  %v206_v6 = vld [vmem:[%s268_s1 + $0x10] sm:$0xff]  }
   0x3   :  { %181 = vmatprep.subr.bf16.mxu0 %v210_v0  ;;  %v207_v7 = vld [vmem:[%s268_s1 + $0x8] sm:$0xff]   ;;  %v208_v8 = vld [vmem:[%s268_s1] sm:$0xff]  }
   0x4   :  { %v209_v9 = vld [vmem:[%s269_s0] sm:$0xff]  }
   0x5   :  { %v169_v10 = vld [vmem:[%s270_s2] ss:$0 sm:$0xff] }
   0x6   :  { %182 = vmatpush3.bf16.msra.mxu0 %v202_v2 }
   0x7   :  { %183 = vmatprep.subr.bf16.mxu0 %v210_v0 }
   0xa   :  { %184 = vmatpush3.bf16.msra.mxu0 %v203_v3 }
   0xb   :  { %185 = vmatprep.subr.bf16.mxu0 %v210_v0 }
   0xe   :  { %186 = vmatpush3.bf16.msra.mxu0 %v204_v4 }
   0xf   :  { %187 = vmatprep.subr.bf16.mxu0 %v210_v0 }
  0x12   :  { %188 = vmatpush3.bf16.msra.mxu0 %v205_v5 }
  0x13   :  { %189 = vmatprep.subr.bf16.mxu0 %v210_v0 }
  0x16   :  { %190 = vmatpush3.bf16.msra.mxu0 %v206_v6 }
  0x17   :  { %191 = vmatprep.subr.bf16.mxu0 %v210_v0 }
  0x1a   :  { %192 = vmatpush3.bf16.msra.mxu0 %v207_v7 }
  0x1b   :  { %193 = vmatprep.subr.bf16.mxu0 %v210_v0 }
  0x1e   :  { %194 = vmatpush3.bf16.msra.mxu0 %v208_v8 }
  0x21   :  { %196 = vmatmul.mubr.bf16.vlgmr.msra.gmra.mxu0 %v209_v9 }
  0xe1   :  { %v129_v11 = vpop.f32.mrf.mxu0 }
  0xe2   :  { %v152_v12 = vadd.f32 %v169_v10, %v129_v11 }
  0xe3   :  { %v197_v13 = vpop.f32.mrf.mxu0 }
  0xe4   :  { %154 = vst [vmem:[%s271_s3] sm:$0xff] %v152_v12 }
  0xe5   :  { %v132_v14 = vpop.f32.mrf.mxu0 }
  0xe6   :  { %v153_v15 = vadd.f32 %v169_v10, %v132_v14 }
  0xe7   :  { %v198_v16 = vpop.f32.mrf.mxu0 }
  0xe8   :  { %155 = vst [vmem:[%s271_s3 + $0x8] sm:$0xff] %v153_v15 }

// kernel: transformer_forward.40
= control target key start
LH: loop header
LB: loop body
LE: loop exit
PB: predicated region body
PF: predicated region fallthrough
CT: control target
= control target key end

     0   :  { %s679_s15 = smov 0   ;;  %s741_s0 = inlined_call_operand.vmem [shape: f32[2,8,32], index: 0, kind: input, shape index: {}]   ;;  %s742_s1 = inlined_call_operand.vmem [shape: f32[2,8,32], index: 1, kind: input, shape index: {}]   ;;  %s743_s2 = inlined_call_operand.vmem [shape: f32[2,8,32], index: 2, kind: input, shape index: {}]   ;;  %s744_s3 = inlined_call_operand.vmem [shape: f32[2,1,8], index: 3, kind: input, shape index: {}]   ;;  %s745_s4 = inlined_call_operand.vmem [shape: f32[2,8,32], index: 4, kind: output, shape index: {}]  }
   0x1 LB: > { %s573_s16 = sadd.s32 4294967295, %s647_s15   ;;  %p577_p0 = scmp.ge.s32.totalorder %s647_s15, 1  ;;  %s647_s15 = sphi %s679_s15, %s14_s15  }
   0x2   : > { %p187_p1 = scmp.lt.s32.totalorder %s647_s15, 3 }
   0x4   : > { %p188_p2 = pnand %p577_p0, %p187_p1 }
   0x5   : > { %p222_p3 = scmp.lt.s32.totalorder (!%p188_p2), %s573_s16, 1  ;;  %s652_s27 = smov (!%p188_p2), 112  }
   0x6   : > { %191 = sbr.rel (%p188_p2) target bundleno = 1363 (0x553), region = 36  ;;  %s653_s5 = smov (!%p188_p2), 16  }
   0xb   : > { %v649_v0 = vmov 0.0   ;;  %vm650_vm0 = vmmov 0   ;;  %s747_s16 = smov (!%p222_p3, %s573_s16), 1  ;;  %vm250_vm1 = vcmask 130048   ;;  %v299_v6 = vlaneseq }
   0xc   : > { %596 = vmatprep.subr.bf16.mxu0 %v649_v0  ;;  %598 = vmatprep.mubr.msk.bf16.mxu0 %vm650_vm0, %v649_v0  ;;  %s693_s17 = sshll.u32 %s747_s16, 3  ;;  %s236_s26 = scalar_lea.vmem %s744_s3, %s747_s16  ;;  %v651_v10 = vmov 0   ;;  %vm305_vm4 = vcmask 64512   ;;  %vm321_vm5 = vcmask 1043456   ;;  %vm485_vm6 = vcmask 261120  }
   0xd   : > { %602 = vmatprep.subr.bf16.mxu1 %v649_v0  ;;  %604 = vmatprep.mubr.msk.bf16.mxu1 %vm650_vm0, %v649_v0  ;;  %s229_s20 = scalar_lea.vmem %s742_s1, %s693_s17  ;;  %s225_s23 = scalar_lea.vmem %s741_s0, %s693_s17  ;;  %v248_v7 = vld [vmem:[%s236_s26] sm:$0x1]  ;;  %v300_v8 = vshrl.u32 %v299_v6, 7 }
   0xe   : > { %v244_v1 = vld [vmem:[%s229_s20] sm:$0xff]  ;;  %vm249_vm2 = vcmp.gt.f32.partialorder %v248_v7, 0.0  ;;  %s233_s30 = scalar_lea.vmem %s743_s2, %s693_s17  ;;  %s240_s8 = scalar_lea.vmem %s745_s4, %s693_s17 }
   0xf   : > { %v245_v2 = vpack.c.bf16 %v244_v1, %v244_v1  ;;  %v242_v4 = vld [vmem:[%s225_s23] sm:$0xff]  ;;  %v301_v9 = vsub.s32 0, %v300_v8  ;;  %v298_v11 = vsel %vm249_vm2, 1, %v651_v10 }
  0x10   : > { %v243_v5 = vpack.c.bf16 %v242_v4, %v242_v4  ;;  %v246_v25 = vld [vmem:[%s233_s30] sm:$0xff] }
  0x11   : > { %v255_v3 = vsel %vm250_vm1, %v245_v2, 0  ;;  %v302_v12 = vrot.slane %v298_v11, %v301_v9  ;;  %369 = vrot.lane.b32.xlu1 %v245_v2, %s652_s27  ;;  %v247_v26 = vpack.c.bf16 %v246_v25, %v246_v25 }
  0x12   : > { %597 = vmatpush3.bf16.xpose.msra.mxu0 %v255_v3 }
  0x13   : > { %614 = vmatprep.subr.bf16.mxu0 %v649_v0  ;;  %vm303_vm3 = vcmp.eq.s32.totalorder %v302_v12, 1  ;;  %v323_v27 = vsel %vm321_vm5, %v247_v26, 0 }
  0x14   : > { %603 = vmatpush3.bf16.msra.mxu1 %v323_v27 }
  0x15   : > { %366 = vrot.lane.b32.xlu1 %v243_v5, %s652_s27  ;;  %608 = vmatprep.subr.bf16.mxu1 %v649_v0 }
  0x19   : > { %599 = vmatmul.mubr.msk.bf16.vlgmr.msra.gmra.mxu0 %vm250_vm1, %v243_v5 }
  0x1a   : > { %616 = vmatprep.mubr.msk.bf16.mxu0 %vm650_vm0, %v649_v0 }
  0x83   : > { %v370_v30 = vpop.permute.xlu1 %369 }
  0x84   : > { %v375_v32 = vsel %vm250_vm1, %v370_v30, 0 }
  0x87   : > { %v367_v34 = vpop.permute.xlu1 %366 }
  0xd9   : > { %v291_v13 = vpop.f32.mrf.mxu0 }
  0xda   : > { %v297_v14 = vmul.f32 0.25, %v291_v13 }
  0xdb   : > { %v600_v15 = vpop.f32.mrf.mxu0 }
  0xdc   : > { %v304_v16 = vsel %vm303_vm3, -1e+09, %v297_v14 }
  0xdd   : > { %v294_v17 = vpop.f32.mrf.mxu0  ;;  %v306_v18 = vsel %vm305_vm4, %v304_v16, -inf }
  0xde   : > { %307 = vmax.xlane.f32.xlu0 %v306_v18 }
  0xdf   : > { %v601_v19 = vpop.f32.mrf.mxu0 }
 0x167   : > { %v308_v20 = vpop.xlane.xlu0 %307 }
 0x168   : > { %v309_v21 = vsub.f32 %v304_v16, %v308_v20 }
 0x16a   : > { %v310_v22 = vmul.f32 1.442695, %v309_v21 }
 0x16c   : > { %633 = vpow2.f32 %v310_v22 }
 0x179   : > { %v634_v23 = vpop.eup %633 }
 0x17a   : > { %v312_v24 = vsel %vm305_vm4, %v634_v23, 0.0 }
 0x17b   : > { %313 = vadd.xlane.f32.xlu0 %v312_v24 }
 0x204   : > { %v314_v28 = vpop.xlane.xlu0 %313 }
 0x205   : > { %635 = vrcp.f32 %v314_v28 }
 0x212   : > { %v636_v29 = vpop.eup %635 }
 0x213   : > { %v316_v31 = vmul.f32 %v636_v29, %v634_v23 }
 0x215   : > { %v317_v33 = vpack.c.bf16 %v316_v31, %v316_v31 }
 0x217   : > { %605 = vmatmul.mubr.msk.bf16.vlgmr.msra.gmra.mxu1 %vm305_vm4, %v317_v33 }
 0x218   : > { %609 = vmatpush3.bf16.xpose.msra.mxu1 %v375_v32  ;;  %610 = vmatprep.mubr.msk.bf16.mxu1 %vm650_vm0, %v649_v0 }
 0x21f   : > { %611 = vmatmul.mubr.msk.bf16.vlgmr.msra.gmra.mxu1 %vm250_vm1, %v367_v34 }
 0x2d7   : > { %v359_v35 = vpop.f32.mrf.mxu1 }
 0x2d9   : > { %v606_v36 = vpop.f32.mrf.mxu1 }
 0x2db   : > { %v362_v37 = vpop.f32.mrf.mxu1 }
 0x2dd   : > { %v607_v38 = vpop.f32.mrf.mxu1 }
 0x2df   : > { %v411_v39 = vpop.f32.mrf.mxu1 }
 0x2e0   : > { %v417_v40 = vmul.f32 0.25, %v411_v39 }
 0x2e1   : > { %v612_v41 = vpop.f32.mrf.mxu1 }
 0x2e2   : > { %v418_v42 = vsel %vm303_vm3, -1e+09, %v417_v40 }
 0x2e3   : > { %v414_v43 = vpop.f32.mrf.mxu1  ;;  %v419_v44 = vsel %vm305_vm4, %v418_v42, -inf }
 0x2e4   : > { %420 = vmax.xlane.f32.xlu0 %v419_v44 }
 0x2e5   : > { %v613_v45 = vpop.f32.mrf.mxu1 }
 0x2fa   : > { %432 = vrot.lane.b32.xlu0 %v247_v26, %s652_s27 }
 0x36d   : > { %v421_v46 = vpop.xlane.xlu0 %420 }
 0x36e   : > { %v422_v47 = vsub.f32 %v418_v42, %v421_v46 }
 0x370   : > { %v423_v48 = vmul.f32 1.442695, %v422_v47 }
 0x371   : > { %v433_v51 = vpop.permute.xlu0 %432 }
 0x372   : > { %637 = vpow2.f32 %v423_v48  ;;  %v438_v52 = vsel %vm321_vm5, %v433_v51, 0 }
 0x373   : > { %615 = vmatpush3.bf16.msra.mxu0 %v438_v52 }
 0x37f   : > { %v638_v49 = vpop.eup %637 }
 0x380   : > { %v425_v50 = vsel %vm305_vm4, %v638_v49, 0.0 }
 0x381   : > { %426 = vadd.xlane.f32.xlu1 %v425_v50 }
 0x40a   : > { %v427_v53 = vpop.xlane.xlu1 %426 }
 0x40b   : > { %639 = vrcp.f32 %v427_v53 }
 0x418   : > { %v640_v54 = vpop.eup %639 }
 0x419   : > { %v429_v55 = vmul.f32 %v640_v54, %v638_v49 }
 0x41b   : > { %v430_v56 = vpack.c.bf16 %v429_v55, %v429_v55 }
 0x41d   : > { %617 = vmatmul.mubr.msk.bf16.vlgmr.msra.gmra.mxu0 %vm305_vm4, %v430_v56 }
 0x4dd   : > { %v474_v57 = vpop.f32.mrf.mxu0 }
 0x4de   : > { %481 = vrot.lane.b32.xlu0 %v474_v57, %s653_s5 }
 0x4df   : > { %v618_v58 = vpop.f32.mrf.mxu0 }
 0x4e1   : > { %v477_v59 = vpop.f32.mrf.mxu0 }
 0x4e3   : > { %v619_v60 = vpop.f32.mrf.mxu0 }
 0x550   : > { %v482_v61 = vpop.permute.xlu0 %481 }
 0x551   : > { %v484_v62 = vsel %vm250_vm1, %v359_v35, %v482_v61 }
 0x552   : > { %486 = vst.msk [vmem:[%s240_s8] sm:$0xff] %vm485_vm6, %v484_v62 }
 0x553 PF: > { %s14_s15 = sadd.s32 1, %s647_s15  }
 0x554   : > { %p11_p4 = scmp.ge.s32.totalorder %s14_s15, 4  }
 0x556   :  { %13 = sbr.rel (!%p11_p4) target bundleno = 1 (0x1), region = 75 }

// kernel: transformer_forward.43
= control target key start
LH: loop header
LB: loop body
LE: loop exit
PB: predicated region body
PF: predicated region fallthrough
CT: control target
= control target key end

     0   :  { %v212_v0 = vmov 0.0   ;;  %vm213_vm0 = vmmov 0   ;;  %s270_s1 = inlined_call_operand.vmem [shape: bf16[128,128], index: 1, kind: input, shape index: {}]   ;;  %s271_s0 = inlined_call_operand.vmem [shape: bf16[16,128], index: 0, kind: input, shape index: {}]   ;;  %s272_s2 = inlined_call_operand.vmem [shape: f32[1,128], index: 2, kind: input, shape index: {}]   ;;  %s273_s3 = inlined_call_operand.vmem [shape: f32[16,128], index: 3, kind: output, shape index: {}]  }
   0x1   :  { %181 = vmatprep.subr.bf16.mxu0 %v212_v0  ;;  %v203_v1 = vld [vmem:[%s270_s1 + $0x38] sm:$0xff]   ;;  %197 = vmatprep.mubr.msk.bf16.mxu0 %vm213_vm0, %v212_v0  ;;  %v204_v2 = vld [vmem:[%s270_s1 + $0x30] sm:$0xff]   ;;  %v205_v3 = vld [vmem:[%s270_s1 + $0x28] sm:$0xff]  }
   0x2   :  { %182 = vmatpush3.bf16.msra.mxu0 %v203_v1  ;;  %v206_v4 = vld [vmem:[%s270_s1 + $0x20] sm:$0xff]   ;;  %v207_v5 = vld [vmem:[%s270_s1 + $0x18] sm:$0xff]   ;;  %v208_v6 = vld [vmem:[%s270_s1 + $0x10] sm:$0xff]  }
   0x3   :  { %183 = vmatprep.subr.bf16.mxu0 %v212_v0  ;;  %v209_v7 = vld [vmem:[%s270_s1 + $0x8] sm:$0xff]   ;;  %v210_v8 = vld [vmem:[%s270_s1] sm:$0xff]  }
   0x4   :  { %v211_v9 = vld [vmem:[%s271_s0] sm:$0xff]  }
   0x5   :  { %v171_v10 = vld [vmem:[%s272_s2] ss:$0 sm:$0xff] }
   0x6   :  { %184 = vmatpush3.bf16.msra.mxu0 %v204_v2 }
   0x7   :  { %185 = vmatprep.subr.bf16.mxu0 %v212_v0 }
   0xa   :  { %186 = vmatpush3.bf16.msra.mxu0 %v205_v3 }
   0xb   :  { %187 = vmatprep.subr.bf16.mxu0 %v212_v0 }
   0xe   :  { %188 = vmatpush3.bf16.msra.mxu0 %v206_v4 }
   0xf   :  { %189 = vmatprep.subr.bf16.mxu0 %v212_v0 }
  0x12   :  { %190 = vmatpush3.bf16.msra.mxu0 %v207_v5 }
  0x13   :  { %191 = vmatprep.subr.bf16.mxu0 %v212_v0 }
  0x16   :  { %192 = vmatpush3.bf16.msra.mxu0 %v208_v6 }
  0x17   :  { %193 = vmatprep.subr.bf16.mxu0 %v212_v0 }
  0x1a   :  { %194 = vmatpush3.bf16.msra.mxu0 %v209_v7 }
  0x1b   :  { %195 = vmatprep.subr.bf16.mxu0 %v212_v0 }
  0x1e   :  { %196 = vmatpush3.bf16.msra.mxu0 %v210_v8 }
  0x21   :  { %198 = vmatmul.mubr.bf16.vlgmr.msra.gmra.mxu0 %v211_v9 }
  0xe1   :  { %v129_v11 = vpop.f32.mrf.mxu0 }
  0xe2   :  { %v152_v12 = vadd.f32 %v171_v10, %v129_v11 }
  0xe3   :  { %v199_v13 = vpop.f32.mrf.mxu0 }
  0xe4   :  { %v154_v14 = vmax.f32 %v152_v12, 0.0 }
  0xe5   :  { %v132_v15 = vpop.f32.mrf.mxu0 }
  0xe6   :  { %156 = vst [vmem:[%s273_s3] sm:$0xff] %v154_v14  ;;  %v153_v16 = vadd.f32 %v171_v10, %v132_v15 }
  0xe7   :  { %v200_v17 = vpop.f32.mrf.mxu0 }
  0xe8   :  { %v155_v18 = vmax.f32 %v153_v16, 0.0 }
  0xea   :  { %157 = vst [vmem:[%s273_s3 + $0x8] sm:$0xff] %v155_v18 }

// kernel: transformer_forward.54
= control target key start
LH: loop header
LB: loop body
LE: loop exit
PB: predicated region body
PF: predicated region fallthrough
CT: control target
= control target key end

     0   :  { %s686_s15 = smov 0   ;;  %s750_s0 = inlined_call_operand.vmem [shape: f32[2,8,32], index: 0, kind: input, shape index: {}]   ;;  %s751_s1 = inlined_call_operand.vmem [shape: f32[2,8,32], index: 1, kind: input, shape index: {}]   ;;  %s752_s2 = inlined_call_operand.vmem [shape: f32[2,8,32], index: 2, kind: input, shape index: {}]   ;;  %s753_s3 = inlined_call_operand.vmem [shape: f32[2,1,8], index: 3, kind: input, shape index: {}]   ;;  %s754_s4 = inlined_call_operand.vmem [shape: f32[2,8,32], index: 4, kind: output, shape index: {}]  }
   0x1 LB: > { %s580_s16 = sadd.s32 4294967295, %s654_s15   ;;  %p584_p0 = scmp.ge.s32.totalorder %s654_s15, 1  ;;  %s654_s15 = sphi %s686_s15, %s14_s15  }
   0x2   : > { %p187_p1 = scmp.lt.s32.totalorder %s654_s15, 3 }
   0x4   : > { %p188_p2 = pnand %p584_p0, %p187_p1 }
   0x5   : > { %p222_p3 = scmp.lt.s32.totalorder (!%p188_p2), %s580_s16, 1  ;;  %s659_s27 = smov (!%p188_p2), 112  }
   0x6   : > { %191 = sbr.rel (%p188_p2) target bundleno = 1365 (0x555), region = 36  ;;  %s660_s5 = smov (!%p188_p2), 16  }
   0xb   : > { %v656_v0 = vmov 0.0   ;;  %vm657_vm0 = vmmov 0   ;;  %s756_s16 = smov (!%p222_p3, %s580_s16), 1  ;;  %vm255_vm1 = vcmask 130048   ;;  %v250_v6 = vlaneseq }
   0xc   : > { %603 = vmatprep.subr.bf16.mxu0 %v656_v0  ;;  %605 = vmatprep.mubr.msk.bf16.mxu0 %vm657_vm0, %v656_v0  ;;  %s700_s17 = sshll.u32 %s756_s16, 3  ;;  %s236_s26 = scalar_lea.vmem %s753_s3, %s756_s16  ;;  %v658_v10 = vmov 0   ;;  %vm311_vm5 = vcmask 64512   ;;  %vm327_vm6 = vcmask 1043456   ;;  %vm492_vm7 = vcmask 261120  }
   0xd   : > { %609 = vmatprep.subr.bf16.mxu1 %v656_v0  ;;  %611 = vmatprep.mubr.msk.bf16.mxu1 %vm657_vm0, %v656_v0  ;;  %s229_s20 = scalar_lea.vmem %s751_s1, %s700_s17  ;;  %s225_s23 = scalar_lea.vmem %s750_s0, %s700_s17  ;;  %v248_v7 = vld [vmem:[%s236_s26] sm:$0x1]  ;;  %v251_v8 = vshrl.u32 %v250_v6, 7  ;;  %v253_v13 = vand.u32 127, %v250_v6 }
   0xe   : > { %v244_v1 = vld [vmem:[%s229_s20] sm:$0xff]  ;;  %vm249_vm2 = vcmp.gt.f32.partialorder %v248_v7, 0.0  ;;  %s233_s30 = scalar_lea.vmem %s752_s2, %s700_s17  ;;  %s240_s8 = scalar_lea.vmem %s754_s4, %s700_s17 }
   0xf   : > { %v245_v2 = vpack.c.bf16 %v244_v1, %v244_v1  ;;  %v242_v4 = vld [vmem:[%s225_s23] sm:$0xff]  ;;  %v306_v9 = vsub.s32 0, %v251_v8  ;;  %v303_v11 = vsel %vm249_vm2, 1, %v658_v10  ;;  %vm254_vm4 = vcmp.gt.s32.totalorder %v253_v13, %v251_v8 }
  0x10   : > { %v243_v5 = vpack.c.bf16 %v242_v4, %v242_v4  ;;  %v246_v27 = vld [vmem:[%s233_s30] sm:$0xff] }
  0x11   : > { %v260_v3 = vsel %vm255_vm1, %v245_v2, 0  ;;  %v307_v12 = vrot.slane %v303_v11, %v306_v9  ;;  %375 = vrot.lane.b32.xlu1 %v245_v2, %s659_s27  ;;  %v247_v28 = vpack.c.bf16 %v246_v27, %v246_v27 }
  0x12   : > { %604 = vmatpush3.bf16.xpose.msra.mxu0 %v260_v3 }
  0x13   : > { %621 = vmatprep.subr.bf16.mxu0 %v656_v0  ;;  %vm308_vm3 = vcmp.eq.s32.totalorder %v307_v12, 1  ;;  %v329_v29 = vsel %vm327_vm6, %v247_v28, 0 }
  0x14   : > { %610 = vmatpush3.bf16.msra.mxu1 %v329_v29 }
  0x15   : > { %372 = vrot.lane.b32.xlu1 %v243_v5, %s659_s27  ;;  %615 = vmatprep.subr.bf16.mxu1 %v656_v0 }
  0x19   : > { %606 = vmatmul.mubr.msk.bf16.vlgmr.msra.gmra.mxu0 %vm255_vm1, %v243_v5 }
  0x1a   : > { %623 = vmatprep.mubr.msk.bf16.mxu0 %vm657_vm0, %v656_v0 }
  0x83   : > { %v376_v32 = vpop.permute.xlu1 %375 }
  0x84   : > { %v381_v34 = vsel %vm255_vm1, %v376_v32, 0 }
  0x87   : > { %v373_v36 = vpop.permute.xlu1 %372 }
  0xd9   : > { %v296_v14 = vpop.f32.mrf.mxu0 }
  0xda   : > { %v302_v15 = vmul.f32 0.25, %v296_v14 }
  0xdb   : > { %v607_v16 = vpop.f32.mrf.mxu0 }
  0xdc   : > { %v309_v17 = vsel %vm308_vm3, -1e+09, %v302_v15 }
  0xdd   : > { %v299_v18 = vpop.f32.mrf.mxu0  ;;  %v310_v19 = vsel %vm254_vm4, -1e+09, %v309_v17 }
  0xde   : > { %v312_v20 = vsel %vm311_vm5, %v310_v19, -inf }
  0xdf   : > { %313 = vmax.xlane.f32.xlu0 %v312_v20  ;;  %v608_v21 = vpop.f32.mrf.mxu0 }
 0x168   : > { %v314_v22 = vpop.xlane.xlu0 %313 }
 0x169   : > { %v315_v23 = vsub.f32 %v310_v19, %v314_v22 }
 0x16b   : > { %v316_v24 = vmul.f32 1.442695, %v315_v23 }
 0x16d   : > { %640 = vpow2.f32 %v316_v24 }
 0x17a   : > { %v641_v25 = vpop.eup %640 }
 0x17b   : > { %v318_v26 = vsel %vm311_vm5, %v641_v25, 0.0 }
 0x17c   : > { %319 = vadd.xlane.f32.xlu0 %v318_v26 }
 0x205   : > { %v320_v30 = vpop.xlane.xlu0 %319 }
 0x206   : > { %642 = vrcp.f32 %v320_v30 }
 0x213   : > { %v643_v31 = vpop.eup %642 }
 0x214   : > { %v322_v33 = vmul.f32 %v643_v31, %v641_v25 }
 0x216   : > { %v323_v35 = vpack.c.bf16 %v322_v33, %v322_v33 }
 0x218   : > { %612 = vmatmul.mubr.msk.bf16.vlgmr.msra.gmra.mxu1 %vm311_vm5, %v323_v35 }
 0x219   : > { %616 = vmatpush3.bf16.xpose.msra.mxu1 %v381_v34  ;;  %617 = vmatprep.mubr.msk.bf16.mxu1 %vm657_vm0, %v656_v0 }
 0x220   : > { %618 = vmatmul.mubr.msk.bf16.vlgmr.msra.gmra.mxu1 %vm255_vm1, %v373_v36 }
 0x2d8   : > { %v365_v37 = vpop.f32.mrf.mxu1 }
 0x2da   : > { %v613_v38 = vpop.f32.mrf.mxu1 }
 0x2dc   : > { %v368_v39 = vpop.f32.mrf.mxu1 }
 0x2de   : > { %v614_v40 = vpop.f32.mrf.mxu1 }
 0x2e0   : > { %v417_v41 = vpop.f32.mrf.mxu1 }
 0x2e1   : > { %v423_v42 = vmul.f32 0.25, %v417_v41 }
 0x2e2   : > { %v619_v43 = vpop.f32.mrf.mxu1 }
 0x2e3   : > { %v424_v44 = vsel %vm308_vm3, -1e+09, %v423_v42 }
 0x2e4   : > { %v420_v45 = vpop.f32.mrf.mxu1  ;;  %v425_v46 = vsel %vm254_vm4, -1e+09, %v424_v44 }
 0x2e5   : > { %v426_v47 = vsel %vm311_vm5, %v425_v46, -inf }
 0x2e6   : > { %427 = vmax.xlane.f32.xlu0 %v426_v47  ;;  %v620_v48 = vpop.f32.mrf.mxu1 }
 0x2fc   : > { %439 = vrot.lane.b32.xlu0 %v247_v28, %s659_s27 }
 0x36f   : > { %v428_v49 = vpop.xlane.xlu0 %427 }
 0x370   : > { %v429_v50 = vsub.f32 %v425_v46, %v428_v49 }
 0x372   : > { %v430_v51 = vmul.f32 1.442695, %v429_v50 }
 0x373   : > { %v440_v54 = vpop.permute.xlu0 %439 }
 0x374   : > { %644 = vpow2.f32 %v430_v51  ;;  %v445_v55 = vsel %vm327_vm6, %v440_v54, 0 }
 0x375   : > { %622 = vmatpush3.bf16.msra.mxu0 %v445_v55 }
 0x381   : > { %v645_v52 = vpop.eup %644 }
 0x382   : > { %v432_v53 = vsel %vm311_vm5, %v645_v52, 0.0 }
 0x383   : > { %433 = vadd.xlane.f32.xlu1 %v432_v53 }
 0x40c   : > { %v434_v56 = vpop.xlane.xlu1 %433 }
 0x40d   : > { %646 = vrcp.f32 %v434_v56 }
 0x41a   : > { %v647_v57 = vpop.eup %646 }
 0x41b   : > { %v436_v58 = vmul.f32 %v647_v57, %v645_v52 }
 0x41d   : > { %v437_v59 = vpack.c.bf16 %v436_v58, %v436_v58 }
 0x41f   : > { %624 = vmatmul.mubr.msk.bf16.vlgmr.msra.gmra.mxu0 %vm311_vm5, %v437_v59 }
 0x4df   : > { %v481_v60 = vpop.f32.mrf.mxu0 }
 0x4e0   : > { %488 = vrot.lane.b32.xlu0 %v481_v60, %s660_s5 }
 0x4e1   : > { %v625_v61 = vpop.f32.mrf.mxu0 }
 0x4e3   : > { %v484_v62 = vpop.f32.mrf.mxu0 }
 0x4e5   : > { %v626_v63 = vpop.f32.mrf.mxu0 }
 0x552   : > { %v489_v0 = vpop.permute.xlu0 %488 }
 0x553   : > { %v491_v1 = vsel %vm255_vm1, %v365_v37, %v489_v0 }
 0x554   : > { %493 = vst.msk [vmem:[%s240_s8] sm:$0xff] %vm492_vm7, %v491_v1 }
 0x555 PF: > { %s14_s15 = sadd.s32 1, %s654_s15  }
 0x556   : > { %p11_p4 = scmp.ge.s32.totalorder %s14_s15, 4  }
 0x558   :  { %13 = sbr.rel (!%p11_p4) target bundleno = 1 (0x1), region = 75 }

</bundles_post_ra>
